<compile_context>
chip_gen: v7x
topology: tpu7x:2x2x1
jax: 0.10.0
libtpu: 0.0.40
codegen_flags: <defaults>
</compile_context>

<pallas_src>
import jax
import jax.numpy as jnp
from jax.experimental import pallas as pl
from jax.experimental.pallas import tpu as pltpu


def _conv_mm_kernel(p_ref, w_ref, b_ref, o_ref):
    """One (n, L-tile) grid step: (C_out, CK) @ (CK, TILE_L) + bias -> (C_out, TILE_L)."""
    p = p_ref[0]                                   # (CK, TILE_L)     pipelined patch tile
    w = w_ref[...]                                 # (C_out, CK)      VMEM-resident
    acc = jnp.dot(w, p, preferred_element_type=jnp.float32)   # lane-dense (C_out, TILE_L)
    o_ref[0] = (acc + b_ref[...]).astype(o_ref.dtype)         # bias (C_out, 1) broadcasts


def _pick_tile_l(l_out, max_tile_l):
    if l_out <= max_tile_l:
        return l_out                               # single full-dim block along L_out (always legal)
    return max(128, (max_tile_l // 128) * 128)     # tiled: must be a multiple of 128 lanes


def conv1d_frontend(x, weight, bias, *, stride, max_tile_l=8192):
    """torch.nn.Conv1d(C_in, C_out, K, stride) forward (no padding, no dilation).

    x:      (N, C_in, L)      float32
    weight: (C_out, C_in, K)  float32
    bias:   (C_out,)          float32
    returns (N, C_out, L_out) float32,  L_out = (L - K)//stride + 1
    """
    N, C_in, L = x.shape
    C_out, C_in_w, K = weight.shape
    assert C_in == C_in_w
    L_out = (L - K) // stride + 1
    CK = C_in * K

    # --- im2col glue (plain JAX), built directly in the transposed (N, CK, L_out) layout ---
    t_idx = jnp.arange(L_out) * stride             # (L_out,)
    k_idx = jnp.arange(K)                          # (K,)
    gidx = k_idx[:, None] + t_idx[None, :]         # (K, L_out)
    patches = x[:, :, gidx]                        # (N, C_in, K, L_out)
    patches = patches.reshape(N, CK, L_out)        # (N, CK, L_out)   lane axis = L_out

    w_mat = weight.reshape(C_out, CK)              # (C_out, CK)
    b2d = bias.reshape(C_out, 1)                   # (C_out, 1)

    tile_l = _pick_tile_l(L_out, max_tile_l)
    grid = (N, pl.cdiv(L_out, tile_l))

    # VMEM budget: double-buffered patch + output tiles + resident weight/bias (+ headroom).
    block_bytes = (CK + C_out) * tile_l * 4
    resident_bytes = (C_out * CK + C_out) * 4
    vmem_limit = min(max(2 * block_bytes + resident_bytes + (8 << 20), 32 << 20), 64 << 20)

    cost = pl.CostEstimate(
        flops=2 * N * L_out * CK * C_out,
        transcendentals=0,
        bytes_accessed=4 * (N * CK * L_out + C_out * CK + C_out + N * C_out * L_out),
    )

    out = pl.pallas_call(
        _conv_mm_kernel,
        out_shape=jax.ShapeDtypeStruct((N, C_out, L_out), jnp.float32),
        grid=grid,
        in_specs=[
            pl.BlockSpec((1, CK, tile_l), lambda n, j: (n, 0, j)),   # patch tile (pipelined)
            pl.BlockSpec((C_out, CK), lambda n, j: (0, 0)),          # weight (resident)
            pl.BlockSpec((C_out, 1), lambda n, j: (0, 0)),           # bias   (resident)
        ],
        out_specs=pl.BlockSpec((1, C_out, tile_l), lambda n, j: (n, 0, j)),  # NCL directly
        compiler_params=pltpu.CompilerParams(
            dimension_semantics=("parallel", "parallel"),
            vmem_limit_bytes=vmem_limit,
        ),
        cost_estimate=cost,
    )(patches, w_mat, b2d)
    return out


def _reference_conv1d(x, weight, bias, *, stride):
    """Pure-JAX elementwise reference (no MXU precision ambiguity)."""
    N, C_in, L = x.shape
    C_out, _, K = weight.shape
    L_out = (L - K) // stride + 1
    t_idx = jnp.arange(L_out) * stride
    k_idx = jnp.arange(K)
    patches = x[:, :, k_idx[:, None] + t_idx[None, :]]      # (N, C_in, K, L_out)
    prod = patches[:, None] * weight[None, :, :, :, None]   # (N, C_out, C_in, K, L_out)
    return prod.sum(axis=(2, 3)) + bias[None, :, None]      # (N, C_out, L_out)


if __name__ == "__main__":
    # Module hyperparameters (Conv1DFrontEnd defaults)
    in_channels, out_channels, kernel_size, stride = 1, 64, 11, 5

    key = jax.random.PRNGKey(0)
    kx1, kx2, kw, kb = jax.random.split(key, 4)

    # Deterministic parameter init (uniform +/- 1/sqrt(fan_in), like torch default)
    fan_in = in_channels * kernel_size
    bound = 1.0 / jnp.sqrt(jnp.float32(fan_in))
    weight = jax.random.uniform(kw, (out_channels, in_channels, kernel_size),
                                jnp.float32, -bound, bound)
    bias = jax.random.uniform(kb, (out_channels,), jnp.float32, -bound, bound)

    # Case 1: small canonical shape (batch=2, L=86 -> L_out=16); single L block.
    N1, L1 = 2, 86
    x1 = jax.random.normal(kx1, (N1, in_channels, L1), jnp.float32)
    out1 = jax.block_until_ready(conv1d_frontend(x1, weight, bias, stride=stride))
    ref1 = _reference_conv1d(x1, weight, bias, stride=stride)
    assert out1.shape == (N1, out_channels, (L1 - kernel_size) // stride + 1), out1.shape
    assert jnp.allclose(out1, ref1, atol=1e-4, rtol=1e-4), "case-1 mismatch vs reference"

    # Case 2: exercises the tiled-L grid path with a partial (masked) edge block:
    #   L=1006 -> L_out=200; max_tile_l=128 -> 128-wide tiles, last tile has 72 valid columns.
    N2, L2 = 2, 1006
    x2 = jax.random.normal(kx2, (N2, in_channels, L2), jnp.float32)
    out2 = jax.block_until_ready(
        conv1d_frontend(x2, weight, bias, stride=stride, max_tile_l=128))
    ref2 = _reference_conv1d(x2, weight, bias, stride=stride)
    assert out2.shape == (N2, out_channels, (L2 - kernel_size) // stride + 1), out2.shape
    assert jnp.allclose(out2, ref2, atol=1e-4, rtol=1e-4), "case-2 mismatch vs reference"

    print("KERNEL_OK")
</pallas_src>

<mosaic_0001>
module attributes {stable_mosaic.version = 11 : i64} {
  func.func @_conv_mm_kernel(%arg0: i32, %arg1: i32, %arg2: memref<1x11x16xf32, #tpu.memory_space<vmem>>, %arg3: memref<64x11xf32, #tpu.memory_space<vmem>>, %arg4: memref<64x1xf32, #tpu.memory_space<vmem>>, %arg5: memref<1x64x16xf32, #tpu.memory_space<vmem>>) attributes {dimension_semantics = [#tpu.dimension_semantics<parallel>, #tpu.dimension_semantics<parallel>], iteration_bounds = array<i64: 2, 1>, scalar_prefetch = 0 : i64, scratch_operands = 0 : i64, tpu.core_type = #tpu.core_type<tc>, window_params = [{transform_indices = @transform_0, window_bounds = array<i64: 1, 11, 16>}, {pipeline_mode = #tpu.pipeline_mode<synchronous>, transform_indices = @transform_1, window_bounds = array<i64: 64, 11>}, {pipeline_mode = #tpu.pipeline_mode<synchronous>, transform_indices = @transform_2, window_bounds = array<i64: 64, 1>}, {transform_indices = @transform_3, window_bounds = array<i64: 1, 64, 16>}]} {
    %c0 = arith.constant 0 : index
    %c0_0 = arith.constant 0 : index
    %c0_1 = arith.constant 0 : index
    %0 = vector.load %arg2[%c0, %c0_0, %c0_1] : memref<1x11x16xf32, #tpu.memory_space<vmem>>, vector<1x11x16xf32>
    %1 = vector.shape_cast %0 : vector<1x11x16xf32> to vector<11x16xf32>
    %c0_2 = arith.constant 0 : index
    %c0_3 = arith.constant 0 : index
    %2 = vector.load %arg3[%c0_2, %c0_3] : memref<64x11xf32, #tpu.memory_space<vmem>>, vector<64x11xf32>
    %cst = arith.constant dense<0.000000e+00> : vector<64x16xf32>
    %3 = tpu.matmul %2, %1, %cst {dimension_numbers = #tpu.dot_dimension_numbers<[1], [0], [0], [1], [0, 0, 1, 1], [], []>} : vector<64x11xf32>, vector<11x16xf32>, vector<64x16xf32> -> vector<64x16xf32>
    %c0_4 = arith.constant 0 : index
    %c0_5 = arith.constant 0 : index
    %4 = vector.load %arg4[%c0_4, %c0_5] : memref<64x1xf32, #tpu.memory_space<vmem>>, vector<64x1xf32>
    %5 = vector.broadcast %4 : vector<64x1xf32> to vector<64x16xf32>
    %6 = arith.addf %3, %5 : vector<64x16xf32>
    %c0_6 = arith.constant 0 : index
    %c0_7 = arith.constant 0 : index
    %c0_8 = arith.constant 0 : index
    %7 = vector.load %arg5[%c0_6, %c0_7, %c0_8] : memref<1x64x16xf32, #tpu.memory_space<vmem>>, vector<1x64x16xf32>
    %8 = vector.shape_cast %7 : vector<1x64x16xf32> to vector<64x16xf32>
    %9 = vector.shape_cast %6 : vector<64x16xf32> to vector<1x64x16xf32>
    tpu.vector_store %arg5[%c0_6, %c0_7, %c0_8], %9 {strides = array<i32>} : memref<1x64x16xf32, #tpu.memory_space<vmem>>, vector<1x64x16xf32>,
    return
  }
  func.func @transform_0(%arg0: i32, %arg1: i32) -> (i32, i32, i32) {
    %c0_i32 = arith.constant 0 : i32
    %c0_i32_0 = arith.constant 0 : i32
    return %arg0, %c0_i32, %arg1 : i32, i32, i32
  }
  func.func @transform_1(%arg0: i32, %arg1: i32) -> (i32, i32) {
    %c0_i32 = arith.constant 0 : i32
    %c0_i32_0 = arith.constant 0 : i32
    %c0_i32_1 = arith.constant 0 : i32
    return %c0_i32, %c0_i32_0 : i32, i32
  }
  func.func @transform_2(%arg0: i32, %arg1: i32) -> (i32, i32) {
    %c0_i32 = arith.constant 0 : i32
    %c0_i32_0 = arith.constant 0 : i32
    %c0_i32_1 = arith.constant 0 : i32
    return %c0_i32, %c0_i32_0 : i32, i32
  }
  func.func @transform_3(%arg0: i32, %arg1: i32) -> (i32, i32, i32) {
    %c0_i32 = arith.constant 0 : i32
    %c0_i32_0 = arith.constant 0 : i32
    return %arg0, %c0_i32, %arg1 : i32, i32, i32
  }
}

</mosaic_0001>

<bundles_post_ra>
// kernel: tpu_custom_call.1
= control target key start
LH: loop header
LB: loop body
LE: loop exit
PB: predicated region body
PF: predicated region fallthrough
CT: control target
= control target key end

     0   :  { %s616_s12 = smov 0   ;;  %s618_s13 = smov 0   ;;  %s717_s0 = inlined_call_operand.vmem [shape: f32[2,11,16], index: 0, kind: input, shape index: {}]   ;;  %s718_s1 = inlined_call_operand.vmem [shape: f32[64,11], index: 1, kind: input, shape index: {}]   ;;  %s719_s2 = inlined_call_operand.vmem [shape: f32[64,1], index: 2, kind: input, shape index: {}]   ;;  %s720_s3 = inlined_call_operand.vmem [shape: f32[2,64,16], index: 3, kind: output, shape index: {}]  }
   0x1   :  { %s620_s14 = smov 0  }
   0x2 LB: > { %s25_s15 = sadd.s32 1, %s588_s13  ;;  %p490_p0 = scmp.ge.s32.totalorder %s592_s14, 1  ;;  %s592_s14 = sphi %s620_s14, %s13_s14   ;;  %s588_s13 = sphi %s618_s13, %s722_s13   ;;  %s584_s12 = sphi %s616_s12, %s721_s12  }
   0x3   : > { %p27_p1 = scmp.ge.s32.totalorder %s25_s15, 2  ;;  %p156_p2 = scmp.lt.s32.totalorder %s592_s14, 3 }
   0x5   : > { %s724_s15 = smov (%p27_p1, %s25_s15), 0  ;;  %p157_p3 = pnand %p490_p0, %p156_p2 }
   0x6   : > { %p186_p4 = scmp.lt.s32.totalorder (!%p157_p3), %s584_s12, 1  ;;  %v204_v0 = vld [vmem:[%s718_s1] sm:$0xff] (!%p157_p3)  ;;  %vm260_vm0 = vcmask (!%p157_p3), 89088   ;;  %v594_v2 = vmov (!%p157_p3), 0   ;;  %vm285_vm1 = vcmask (!%p157_p3), 1042432   ;;  %v214_v3 = vld [vmem:[%s719_s2 + $0x10] sm:$0xff] (!%p157_p3) }
   0x7   : > { %160 = sbr.rel (%p157_p3) target bundleno = 244 (0xf4), region = 32  ;;  %v208_v1 = vld [vmem:[%s718_s1 + $0x20] sm:$0xff] (!%p157_p3)  ;;  %522 = vmatprep.mubr.msk.f32.mxu0 (!%p157_p3), %vm260_vm0, %v204_v0  ;;  %569 = vset.pattern.permute.xlu1 (!%p157_p3), %v594_v2  ;;  %v215_v5 = vld [vmem:[%s719_s2 + $0x18] sm:$0xff] (!%p157_p3)  ;;  %v213_v6 = vld [vmem:[%s719_s2 + $0x8] sm:$0xff] (!%p157_p3)  ;;  %vm595_vm2 = vmmov (!%p157_p3), 1   ;;  %vm394_vm4 = vcmask (!%p157_p3), 130048  }
   0x8   : > { %528 = vmatprep.mubr.msk.f32.mxu1 (!%p157_p3), %vm260_vm0, %v208_v1  ;;  %568 = vset.pattern.permute.xlu0 (!%p157_p3), %v594_v2  ;;  %v212_v4 = vld [vmem:[%s719_s2] sm:$0xff] (!%p157_p3)  ;;  %vm535_vm3 = vmpackc.low (!%p157_p3), %vm285_vm1, %vm595_vm2  ;;  %v217_v10 = vld [vmem:[%s719_s2 + $0x28] sm:$0xff] (!%p157_p3) }
   0x9   : > { %232 = vperm.xlu1 (!%p157_p3), %569, %v214_v3   ;;  %222 = vperm.xlu0 (!%p157_p3), %568, %v212_v4   ;;  %v216_v11 = vld [vmem:[%s719_s2 + $0x20] sm:$0xff] (!%p157_p3)  ;;  %v205_v12 = vld [vmem:[%s718_s1 + $0x8] sm:$0xff] (!%p157_p3)  ;;  %v206_v14 = vld [vmem:[%s718_s1 + $0x10] sm:$0xff] (!%p157_p3) }
   0xa   : > { %v209_v13 = vld [vmem:[%s718_s1 + $0x28] sm:$0xff] (!%p157_p3)  ;;  %v210_v15 = vld [vmem:[%s718_s1 + $0x30] sm:$0xff] (!%p157_p3)  ;;  %v219_v16 = vld [vmem:[%s719_s2 + $0x38] sm:$0xff] (!%p157_p3) }
   0xb   : > { %v218_v17 = vld [vmem:[%s719_s2 + $0x30] sm:$0xff] (!%p157_p3)  ;;  %v207_v18 = vld [vmem:[%s718_s1 + $0x18] sm:$0xff] (!%p157_p3) }
   0xc   : > { %v211_v19 = vld [vmem:[%s718_s1 + $0x38] sm:$0xff] (!%p157_p3) }
   0xd   : > { %237 = vperm.xlu1 (!%p157_p3), %569, %v215_v5   ;;  %227 = vperm.xlu0 (!%p157_p3), %568, %v213_v6  }
   0xe   : > { %s726_s12 = smov (!%p186_p4, %s584_s12), 1 }
   0xf   : > { %s506_s24 = sshll.u32 %s726_s12, 4  ;;  %s507_s29 = sshll.u32 %s726_s12, 6 }
  0x10   : > { %s193_s27 = scalar_lea.vmem %s717_s0, %s506_s24  ;;  %s201_s5 = scalar_lea.vmem %s720_s3, %s507_s29 }
  0x11   : > { %v202_v7 = vld [vmem:[%s193_s27] sm:$0xff]  ;;  %v203_v8 = vld [vmem:[%s193_s27 + $0x8] sm:$0x7]  ;;  %247 = vperm.xlu1 %569, %v217_v10   ;;  %242 = vperm.xlu0 %568, %v216_v11  }
  0x12   : > { %v534_v9 = vpack.c.bf16 %v203_v8, %v202_v7 }
  0x14   : > { %536 = vmatprep.subr.msk.bf16.mxu0 %vm535_vm3, %v534_v9  ;;  %540 = vmatprep.subr.msk.bf16.mxu1 %vm535_vm3, %v534_v9 }
  0x15   : > { %539 = vmatpush3.bf16.msk.msra.mxu0 %vm535_vm3, %v534_v9  ;;  %541 = vmatpush3.bf16.msk.msra.mxu1 %vm535_vm3, %v534_v9 }
  0x16   : > { %257 = vperm.xlu1 %569, %v219_v16   ;;  %252 = vperm.xlu0 %568, %v218_v17  }
  0x18   : > { %523 = vmatmul.mubr.msk.f32.vlgmr.msra.gmra.mrb[0].mxu0 %vm260_vm0, %v205_v12  ;;  %529 = vmatmul.mubr.msk.f32.vlgmr.msra.gmra.mrb[0].mxu1 %vm260_vm0, %v209_v13 }
  0x19   : > { %525 = vmatprep.mubr.msk.f32.mxu0 %vm260_vm0, %v206_v14  ;;  %531 = vmatprep.mubr.msk.f32.mxu1 %vm260_vm0, %v210_v15 }
  0x1c   : > { %526 = vmatmul.mubr.msk.f32.gmra.mrb[2].mxu0 %vm260_vm0, %v207_v18  ;;  %532 = vmatmul.mubr.msk.f32.gmra.mrb[2].mxu1 %vm260_vm0, %v211_v19 }
  0x88   : > { %v233_v20 = vpop.permute.xlu1 %232  ;;  %v223_v21 = vpop.permute.xlu0 %222 }
  0x8c   : > { %v238_v22 = vpop.permute.xlu1 %237  ;;  %v228_v23 = vpop.permute.xlu0 %227 }
  0x90   : > { %v248_v24 = vpop.permute.xlu1 %247  ;;  %v243_v25 = vpop.permute.xlu0 %242 }
  0x95   : > { %v258_v34 = vpop.permute.xlu1 %257  ;;  %v253_v35 = vpop.permute.xlu0 %252 }
  0xeb   : > { %v524_v26 = vpop.f32.mrb[0].mxu0  ;;  %v530_v27 = vpop.f32.mrb[0].mxu1 }
  0xec   : > { %v361_v28 = vadd.f32 %v524_v26, %v228_v23  ;;  %v381_v29 = vadd.f32 %v530_v27, %v248_v24  ;;  %v355_v30 = vpop.f32.mrb[1].mxu0  ;;  %v375_v31 = vpop.f32.mrb[1].mxu1 }
  0xed   : > { %v356_v32 = vadd.f32 %v355_v30, %v223_v21  ;;  %v376_v33 = vadd.f32 %v375_v31, %v243_v25 }
  0xee   : > { %396 = vst.msk [vmem:[%s201_s5 + $0x8] sm:$0xff] %vm394_vm4, %v361_v28  ;;  %400 = vst.msk [vmem:[%s201_s5 + $0x28] sm:$0xff] %vm394_vm4, %v381_v29 }
  0xef   : > { %395 = vst.msk [vmem:[%s201_s5] sm:$0xff] %vm394_vm4, %v356_v32  ;;  %399 = vst.msk [vmem:[%s201_s5 + $0x20] sm:$0xff] %vm394_vm4, %v376_v33  ;;  %v527_v36 = vpop.f32.mrb[2].mxu0  ;;  %v533_v37 = vpop.f32.mrb[2].mxu1 }
  0xf0   : > { %v371_v38 = vadd.f32 %v527_v36, %v238_v22  ;;  %v391_v39 = vadd.f32 %v533_v37, %v258_v34  ;;  %v365_v40 = vpop.f32.mrb[3].mxu0  ;;  %v385_v41 = vpop.f32.mrb[3].mxu1 }
  0xf1   : > { %v366_v42 = vadd.f32 %v365_v40, %v233_v20  ;;  %v386_v43 = vadd.f32 %v385_v41, %v253_v35 }
  0xf2   : > { %398 = vst.msk [vmem:[%s201_s5 + $0x18] sm:$0xff] %vm394_vm4, %v371_v38  ;;  %402 = vst.msk [vmem:[%s201_s5 + $0x38] sm:$0xff] %vm394_vm4, %v391_v39 }
  0xf3   : > { %397 = vst.msk [vmem:[%s201_s5 + $0x10] sm:$0xff] %vm394_vm4, %v366_v42  ;;  %401 = vst.msk [vmem:[%s201_s5 + $0x30] sm:$0xff] %vm394_vm4, %v386_v43 }
  0xf4 PF: > { %s13_s14 = sadd.s32 1, %s592_s14   ;;  %s721_s12 = smov %s588_s13 }
  0xf5   : > { %p10_p5 = scmp.ge.s32.totalorder %s13_s14, 4   ;;  %s722_s13 = smov %s724_s15 }
  0xf7   :  { %12 = sbr.rel (!%p10_p5) target bundleno = 2 (0x2), region = 62 }

</bundles_post_ra>
